<compile_context>
chip_gen: v7x
topology: tpu7x:2x2x1
jax: 0.10.0
libtpu: 0.0.40
codegen_flags: <defaults>
</compile_context>

<pallas_src>
import functools

import jax
import jax.numpy as jnp
from jax.experimental import pallas as pl
from jax.experimental.pallas import tpu as pltpu

LANE = 128
TM_MAX = 2048   # rows of 128 lanes per block -> 1 MiB f32 per input per buffer
NCORES = 2      # "parallel" split for v7x megacore; harmless on 1-TC chips


def _round_up(a, b):
    return ((a + b - 1) // b) * b


def _dice_bce_kernel(x_ref, t_ref, out_ref, *, n, tm):
    c = pl.program_id(0)          # core / parallel axis
    i = pl.program_id(1)          # reduction (arbitrary) axis

    @pl.when(i == 0)
    def _():
        out_ref[...] = jnp.zeros_like(out_ref)

    # Global element index of each slot in this block (logical, pre-clamp).
    blk = c * pl.num_programs(1) + i
    row0 = blk * tm
    ridx = row0 + jax.lax.broadcasted_iota(jnp.int32, (tm, LANE), 0)
    lidx = jax.lax.broadcasted_iota(jnp.int32, (tm, LANE), 1)
    valid = (ridx * LANE + lidx) < n

    # Mask padding / out-of-range slots before any math so garbage (incl. NaN)
    # from clamped or partial blocks cannot propagate.
    x = jnp.where(valid, x_ref[...].astype(jnp.float32), -100.0)
    t = jnp.where(valid, t_ref[...].astype(jnp.float32), 0.0)

    # sigmoid + softplus sharing one exp (3 EUP transcendentals / element).
    e = jnp.exp(-jnp.abs(x))                     # EUP exp
    inv = 1.0 / (1.0 + e)                        # EUP reciprocal
    p = jnp.where(x >= 0.0, inv, e * inv)        # sigmoid(x)
    # BCE from logits: softplus(x) - x*t  ==  -(t*log p + (1-t)*log(1-p))
    bce = jnp.maximum(x, 0.0) - x * t + jnp.log1p(e)   # EUP log1p

    def red(v):  # (tm, 128) -> (8, 128): pure vreg-wise VPU adds, no XLU.
        return jnp.sum(v.reshape(tm // 8, 8, LANE), axis=0)

    out_ref[0, 0] += red(p * t)   # intersection
    out_ref[0, 1] += red(p)       # sum of predictions
    out_ref[0, 2] += red(t)       # sum of targets
    out_ref[0, 3] += red(bce)     # BCE sum


def dice_bce_loss(inputs, targets, smooth=1.0):
    """DiceBCELoss.forward: BCE(sigmoid(inputs), targets) + (1 - dice)."""
    n = int(inputs.size)
    x = inputs.reshape(-1)
    t = targets.reshape(-1)

    # Pad only to a multiple of 8*128 (<= 1023 extra elements); for typical
    # segmentation maps this is zero and the reshape below is a free view.
    rows = _round_up(pl.cdiv(n, LANE), 8)
    pad = rows * LANE - n
    if pad:
        x = jnp.pad(x, (0, pad))
        t = jnp.pad(t, (0, pad))
    x2 = x.reshape(rows, LANE)
    t2 = t.reshape(rows, LANE)

    tm = min(TM_MAX, rows)                       # multiple of 8 by construction
    total_blocks = pl.cdiv(rows, tm)
    bpc = pl.cdiv(total_blocks, NCORES)          # blocks per core

    def idx_map(c, i):
        # Clamp so the DMA never targets a fully out-of-range block; the
        # in-kernel iota mask (based on the logical block id) zeroes any
        # duplicated / overhanging data.
        return (jnp.minimum(c * bpc + i, total_blocks - 1), 0)

    kernel = functools.partial(_dice_bce_kernel, n=n, tm=tm)

    partials = pl.pallas_call(
        kernel,
        out_shape=jax.ShapeDtypeStruct((NCORES, 4, 8, LANE), jnp.float32),
        grid_spec=pltpu.PrefetchScalarGridSpec(
            num_scalar_prefetch=0,
            grid=(NCORES, bpc),
            in_specs=[
                pl.BlockSpec((tm, LANE), idx_map),
                pl.BlockSpec((tm, LANE), idx_map),
            ],
            out_specs=pl.BlockSpec((1, 4, 8, LANE), lambda c, i: (c, 0, 0, 0)),
        ),
        compiler_params=pltpu.CompilerParams(
            dimension_semantics=("parallel", "arbitrary"),
        ),
    )(x2, t2)

    # Tiny final combine + scalar loss math (per perf review: keep it out of the
    # streaming kernel).
    sums = jnp.sum(partials, axis=(0, 2, 3))     # (4,)
    inter, psum, tsum, bce_sum = sums[0], sums[1], sums[2], sums[3]
    dice = (2.0 * inter + smooth) / (psum + tsum + smooth)
    return bce_sum / n + (1.0 - dice)


def _reference(inputs, targets, smooth=1.0):
    p = jax.nn.sigmoid(inputs.reshape(-1).astype(jnp.float32))
    t = targets.reshape(-1).astype(jnp.float32)
    inter = jnp.sum(p * t)
    dice = (2.0 * inter + smooth) / (jnp.sum(p) + jnp.sum(t) + smooth)
    bce = jnp.mean(-(t * jnp.log(p) + (1.0 - t) * jnp.log(1.0 - p)))
    return bce + (1.0 - dice)


if __name__ == "__main__":
    key = jax.random.PRNGKey(0)
    k1, k2 = jax.random.split(key)
    B, C, H, W = 2, 1, 16, 16  # binary segmentation: single channel
    logits = jax.random.normal(k1, (B, C, H, W), dtype=jnp.float32)
    targets = (jax.random.uniform(k2, (B, C, H, W)) > 0.5).astype(jnp.float32)

    loss = dice_bce_loss(logits, targets, smooth=1.0)
    loss = jax.block_until_ready(loss)

    ref = _reference(logits, targets, smooth=1.0)
    assert jnp.allclose(loss, ref, rtol=1e-5, atol=1e-5), (loss, ref)
    print("KERNEL_OK")
</pallas_src>

<mosaic_0001>
module attributes {stable_mosaic.version = 11 : i64} {
  func.func @_dice_bce_kernel(%arg0: i32, %arg1: i32, %arg2: memref<8x128xf32, #tpu.memory_space<vmem>>, %arg3: memref<8x128xf32, #tpu.memory_space<vmem>>, %arg4: memref<1x4x8x128xf32, #tpu.memory_space<vmem>>) attributes {dimension_semantics = [#tpu.dimension_semantics<parallel>, #tpu.dimension_semantics<arbitrary>], iteration_bounds = array<i64: 2, 1>, scalar_prefetch = 0 : i64, scratch_operands = 0 : i64, tpu.core_type = #tpu.core_type<tc>, window_params = [{transform_indices = @transform_0, window_bounds = array<i64: 8, 128>}, {transform_indices = @transform_1, window_bounds = array<i64: 8, 128>}, {transform_indices = @transform_2, window_bounds = array<i64: 1, 4, 8, 128>}]} {
    %c0_i32 = arith.constant 0 : i32
    %0 = arith.cmpi eq, %arg1, %c0_i32 : i32
    %1 = arith.extui %0 : i1 to i32
    %c0_i32_0 = arith.constant 0 : i32
    %2 = arith.cmpi ne, %1, %c0_i32_0 : i32
    scf.if %2 {
      %cst_43 = arith.constant 0.000000e+00 : f32
      %72 = vector.broadcast %cst_43 : f32 to vector<1x4x8x128xf32>
      %c0_44 = arith.constant 0 : index
      %c0_45 = arith.constant 0 : index
      %c0_46 = arith.constant 0 : index
      %c0_47 = arith.constant 0 : index
      %73 = vector.load %arg4[%c0_44, %c0_45, %c0_46, %c0_47] : memref<1x4x8x128xf32, #tpu.memory_space<vmem>>, vector<1x4x8x128xf32>
      tpu.vector_store %arg4[%c0_44, %c0_45, %c0_46, %c0_47], %72 {strides = array<i32>} : memref<1x4x8x128xf32, #tpu.memory_space<vmem>>, vector<1x4x8x128xf32>,
    } else {
    }
    %c1_i32 = arith.constant 1 : i32
    %3 = arith.muli %arg0, %c1_i32 : i32
    %4 = arith.addi %3, %arg1 : i32
    %c8_i32 = arith.constant 8 : i32
    %5 = arith.muli %4, %c8_i32 : i32
    %6 = tpu.iota {dimensions = array<i32: 0>} : vector<8x128xi32>
    %7 = vector.broadcast %5 : i32 to vector<8x128xi32>
    %8 = arith.addi %7, %6 : vector<8x128xi32>
    %9 = tpu.iota {dimensions = array<i32: 1>} : vector<8x128xi32>
    %c128_i32 = arith.constant 128 : i32
    %10 = vector.broadcast %c128_i32 : i32 to vector<8x128xi32>
    %11 = arith.muli %8, %10 : vector<8x128xi32>
    %12 = arith.addi %11, %9 : vector<8x128xi32>
    %c512_i32 = arith.constant 512 : i32
    %13 = vector.broadcast %c512_i32 : i32 to vector<8x128xi32>
    %14 = arith.cmpi slt, %12, %13 : vector<8x128xi32>
    %c0 = arith.constant 0 : index
    %c0_1 = arith.constant 0 : index
    %15 = vector.load %arg2[%c0, %c0_1] : memref<8x128xf32, #tpu.memory_space<vmem>>, vector<8x128xf32>
    %cst = arith.constant -1.000000e+02 : f32
    %16 = vector.broadcast %cst : f32 to vector<8x128xf32>
    %17 = arith.select %14, %15, %16 : vector<8x128xi1>, vector<8x128xf32>
    %c0_2 = arith.constant 0 : index
    %c0_3 = arith.constant 0 : index
    %18 = vector.load %arg3[%c0_2, %c0_3] : memref<8x128xf32, #tpu.memory_space<vmem>>, vector<8x128xf32>
    %cst_4 = arith.constant 0.000000e+00 : f32
    %19 = vector.broadcast %cst_4 : f32 to vector<8x128xf32>
    %20 = arith.select %14, %18, %19 : vector<8x128xi1>, vector<8x128xf32>
    %21 = math.absf %17 : vector<8x128xf32>
    %cst_5 = arith.constant 0.000000e+00 : f32
    %22 = vector.broadcast %cst_5 : f32 to vector<8x128xf32>
    %23 = arith.subf %22, %21 : vector<8x128xf32>
    %24 = math.exp %23 : vector<8x128xf32>
    %cst_6 = arith.constant 1.000000e+00 : f32
    %25 = vector.broadcast %cst_6 : f32 to vector<8x128xf32>
    %26 = arith.addf %25, %24 : vector<8x128xf32>
    %cst_7 = arith.constant 1.000000e+00 : f32
    %27 = vector.broadcast %cst_7 : f32 to vector<8x128xf32>
    %28 = arith.divf %27, %26 : vector<8x128xf32>
    %cst_8 = arith.constant 0.000000e+00 : f32
    %29 = vector.broadcast %cst_8 : f32 to vector<8x128xf32>
    %30 = arith.cmpf oge, %17, %29 : vector<8x128xf32>
    %31 = arith.mulf %24, %28 : vector<8x128xf32>
    %32 = arith.select %30, %28, %31 : vector<8x128xi1>, vector<8x128xf32>
    %cst_9 = arith.constant 0.000000e+00 : f32
    %33 = vector.broadcast %cst_9 : f32 to vector<8x128xf32>
    %34 = arith.maximumf %17, %33 : vector<8x128xf32>
    %35 = arith.mulf %17, %20 : vector<8x128xf32>
    %36 = arith.subf %34, %35 : vector<8x128xf32>
    %37 = math.log1p %24 : vector<8x128xf32>
    %38 = arith.addf %36, %37 : vector<8x128xf32>
    %c0_10 = arith.constant 0 : index
    %c0_11 = arith.constant 0 : index
    %c0_12 = arith.constant 0 : index
    %c0_13 = arith.constant 0 : index
    %39 = vector.load %arg4[%c0_10, %c0_11, %c0_12, %c0_13] : memref<1x4x8x128xf32, #tpu.memory_space<vmem>>, vector<1x1x8x128xf32>
    %40 = vector.shape_cast %39 : vector<1x1x8x128xf32> to vector<8x128xf32>
    %41 = arith.mulf %32, %20 : vector<8x128xf32>
    %42 = vector.shape_cast %41 : vector<8x128xf32> to vector<1x8x128xf32>
    %cst_14 = arith.constant dense<0.000000e+00> : vector<8x128xf32>
    %43 = vector.multi_reduction <add>, %42, %cst_14 [0] : vector<1x8x128xf32> to vector<8x128xf32>
    %44 = arith.addf %40, %43 : vector<8x128xf32>
    %c0_15 = arith.constant 0 : index
    %c0_16 = arith.constant 0 : index
    %c0_17 = arith.constant 0 : index
    %c0_18 = arith.constant 0 : index
    %45 = vector.load %arg4[%c0_15, %c0_16, %c0_17, %c0_18] : memref<1x4x8x128xf32, #tpu.memory_space<vmem>>, vector<1x1x8x128xf32>
    %46 = vector.shape_cast %45 : vector<1x1x8x128xf32> to vector<8x128xf32>
    %47 = vector.shape_cast %44 : vector<8x128xf32> to vector<1x1x8x128xf32>
    tpu.vector_store %arg4[%c0_15, %c0_16, %c0_17, %c0_18], %47 {strides = array<i32>} : memref<1x4x8x128xf32, #tpu.memory_space<vmem>>, vector<1x1x8x128xf32>,
    %c0_19 = arith.constant 0 : index
    %c1 = arith.constant 1 : index
    %c0_20 = arith.constant 0 : index
    %c0_21 = arith.constant 0 : index
    %48 = vector.load %arg4[%c0_19, %c1, %c0_20, %c0_21] : memref<1x4x8x128xf32, #tpu.memory_space<vmem>>, vector<1x1x8x128xf32>
    %49 = vector.shape_cast %48 : vector<1x1x8x128xf32> to vector<8x128xf32>
    %50 = vector.shape_cast %32 : vector<8x128xf32> to vector<1x8x128xf32>
    %cst_22 = arith.constant dense<0.000000e+00> : vector<8x128xf32>
    %51 = vector.multi_reduction <add>, %50, %cst_22 [0] : vector<1x8x128xf32> to vector<8x128xf32>
    %52 = arith.addf %49, %51 : vector<8x128xf32>
    %c0_23 = arith.constant 0 : index
    %c1_24 = arith.constant 1 : index
    %c0_25 = arith.constant 0 : index
    %c0_26 = arith.constant 0 : index
    %53 = vector.load %arg4[%c0_23, %c1_24, %c0_25, %c0_26] : memref<1x4x8x128xf32, #tpu.memory_space<vmem>>, vector<1x1x8x128xf32>
    %54 = vector.shape_cast %53 : vector<1x1x8x128xf32> to vector<8x128xf32>
    %55 = vector.shape_cast %52 : vector<8x128xf32> to vector<1x1x8x128xf32>
    tpu.vector_store %arg4[%c0_23, %c1_24, %c0_25, %c0_26], %55 {strides = array<i32>} : memref<1x4x8x128xf32, #tpu.memory_space<vmem>>, vector<1x1x8x128xf32>,
    %c0_27 = arith.constant 0 : index
    %c2 = arith.constant 2 : index
    %c0_28 = arith.constant 0 : index
    %c0_29 = arith.constant 0 : index
    %56 = vector.load %arg4[%c0_27, %c2, %c0_28, %c0_29] : memref<1x4x8x128xf32, #tpu.memory_space<vmem>>, vector<1x1x8x128xf32>
    %57 = vector.shape_cast %56 : vector<1x1x8x128xf32> to vector<8x128xf32>
    %58 = vector.shape_cast %20 : vector<8x128xf32> to vector<1x8x128xf32>
    %cst_30 = arith.constant dense<0.000000e+00> : vector<8x128xf32>
    %59 = vector.multi_reduction <add>, %58, %cst_30 [0] : vector<1x8x128xf32> to vector<8x128xf32>
    %60 = arith.addf %57, %59 : vector<8x128xf32>
    %c0_31 = arith.constant 0 : index
    %c2_32 = arith.constant 2 : index
    %c0_33 = arith.constant 0 : index
    %c0_34 = arith.constant 0 : index
    %61 = vector.load %arg4[%c0_31, %c2_32, %c0_33, %c0_34] : memref<1x4x8x128xf32, #tpu.memory_space<vmem>>, vector<1x1x8x128xf32>
    %62 = vector.shape_cast %61 : vector<1x1x8x128xf32> to vector<8x128xf32>
    %63 = vector.shape_cast %60 : vector<8x128xf32> to vector<1x1x8x128xf32>
    tpu.vector_store %arg4[%c0_31, %c2_32, %c0_33, %c0_34], %63 {strides = array<i32>} : memref<1x4x8x128xf32, #tpu.memory_space<vmem>>, vector<1x1x8x128xf32>,
    %c0_35 = arith.constant 0 : index
    %c3 = arith.constant 3 : index
    %c0_36 = arith.constant 0 : index
    %c0_37 = arith.constant 0 : index
    %64 = vector.load %arg4[%c0_35, %c3, %c0_36, %c0_37] : memref<1x4x8x128xf32, #tpu.memory_space<vmem>>, vector<1x1x8x128xf32>
    %65 = vector.shape_cast %64 : vector<1x1x8x128xf32> to vector<8x128xf32>
    %66 = vector.shape_cast %38 : vector<8x128xf32> to vector<1x8x128xf32>
    %cst_38 = arith.constant dense<0.000000e+00> : vector<8x128xf32>
    %67 = vector.multi_reduction <add>, %66, %cst_38 [0] : vector<1x8x128xf32> to vector<8x128xf32>
    %68 = arith.addf %65, %67 : vector<8x128xf32>
    %c0_39 = arith.constant 0 : index
    %c3_40 = arith.constant 3 : index
    %c0_41 = arith.constant 0 : index
    %c0_42 = arith.constant 0 : index
    %69 = vector.load %arg4[%c0_39, %c3_40, %c0_41, %c0_42] : memref<1x4x8x128xf32, #tpu.memory_space<vmem>>, vector<1x1x8x128xf32>
    %70 = vector.shape_cast %69 : vector<1x1x8x128xf32> to vector<8x128xf32>
    %71 = vector.shape_cast %68 : vector<8x128xf32> to vector<1x1x8x128xf32>
    tpu.vector_store %arg4[%c0_39, %c3_40, %c0_41, %c0_42], %71 {strides = array<i32>} : memref<1x4x8x128xf32, #tpu.memory_space<vmem>>, vector<1x1x8x128xf32>,
    return
  }
  func.func @transform_0(%arg0: i32, %arg1: i32) -> (i32, i32) {
    %c1_i32 = arith.constant 1 : i32
    %0 = arith.muli %arg0, %c1_i32 : i32
    %1 = arith.addi %0, %arg1 : i32
    %c0_i32 = arith.constant 0 : i32
    %2 = arith.minsi %1, %c0_i32 : i32
    %c0_i32_0 = arith.constant 0 : i32
    %c0_i32_1 = arith.constant 0 : i32
    return %2, %c0_i32_0 : i32, i32
  }
  func.func @transform_1(%arg0: i32, %arg1: i32) -> (i32, i32) {
    %c1_i32 = arith.constant 1 : i32
    %0 = arith.muli %arg0, %c1_i32 : i32
    %1 = arith.addi %0, %arg1 : i32
    %c0_i32 = arith.constant 0 : i32
    %2 = arith.minsi %1, %c0_i32 : i32
    %c0_i32_0 = arith.constant 0 : i32
    %c0_i32_1 = arith.constant 0 : i32
    return %2, %c0_i32_0 : i32, i32
  }
  func.func @transform_2(%arg0: i32, %arg1: i32) -> (i32, i32, i32, i32) {
    %c0_i32 = arith.constant 0 : i32
    %c0_i32_0 = arith.constant 0 : i32
    %c0_i32_1 = arith.constant 0 : i32
    %c0_i32_2 = arith.constant 0 : i32
    return %arg0, %c0_i32, %c0_i32_0, %c0_i32_1 : i32, i32, i32, i32
  }
}

</mosaic_0001>

<bundles_post_ra>
// kernel: tpu_custom_call.1
= control target key start
LH: loop header
LB: loop body
LE: loop exit
PB: predicated region body
PF: predicated region fallthrough
CT: control target
= control target key end

     0   :  { %7 = vsyncpa [#allocation3], 0  ;;  %s946_s0 = inlined_call_operand.hbm [shape: f32[8,128], index: 0, kind: input, shape index: {}]   ;;  %s947_s1 = inlined_call_operand.hbm [shape: f32[8,128], index: 1, kind: input, shape index: {}]   ;;  %s948_s2 = inlined_call_operand.hbm [shape: f32[2,4,8,128], index: 2, kind: output, shape index: {}]  }
   0x1   :  { %9 = vsyncpa [#allocation3 + $0x1], 0 }
   0x2   :  { %10 = vsyncpa [#allocation6], 0 }
   0x3   :  { %12 = vsyncpa [#allocation6 + $0x1], 0 }
   0x4   :  { %13 = vsyncpa [#allocation4], 0 }
   0x5   :  { %15 = vsyncpa [#allocation4 + $0x1], 0  ;;  %s730_s9 = smov 0   ;;  %s732_s10 = smov 0  }
   0x6   :  { %s734_s11 = smov 0   ;;  %s736_s12 = smov 0  }
   0x7   :  { %s738_s13 = smov 0   ;;  %s740_s14 = smov 0  }
   0x8   :  { %s742_s15 = smov 0   ;;  %s744_s16 = smov 0  }
   0x9 LB: > { %s416_s17 = sadd.s32 4294967295, %s708_s16   ;;  %s417_s18 = sadd.s32 4294967294, %s708_s16   ;;  %s708_s16 = sphi %s744_s16, %s21_s16   ;;  %s704_s15 = sphi %s742_s15, %s969_s15   ;;  %s700_s14 = sphi %s740_s14, %s968_s14   ;;  %s696_s13 = sphi %s738_s13, %s936_s13   ;;  %s692_s12 = sphi %s736_s12, %s967_s12   ;;  %s688_s11 = sphi %s734_s11, %s966_s11   ;;  %s684_s10 = sphi %s732_s10, %s965_s10   ;;  %s680_s9 = sphi %s730_s9, %s964_s9  }
   0xa   : > { %s33_s19 = sadd.s32 1, %s704_s15  ;;  %p677_p1 = scmp.ne.s32.totalorder %s696_s13, 0 }
   0xb   : > { %p35_p0 = scmp.ge.s32.totalorder %s33_s19, 2  ;;  %p54_p2 = scmp.eq.s32.totalorder %s708_s16, 0 }
   0xc   : > { %p59_p3 = scmp.ne.s32.totalorder %s696_s13, %s692_s12  ;;  %p60_p5 = scmp.eq.s32.totalorder %s416_s17, 0 }
   0xd   : > { %s971_s19 = smov (%p35_p0, %s33_s19), 0  ;;  %p776_p4 = por %p677_p1, %p54_p2 }
   0xe   : > { %p780_p6 = por %p60_p5, %p59_p3  ;;  %s101_s22 = ssub.s32 %s704_s15, %s971_s19 }
   0xf   : > { %p102_p7 = scmp.eq.s32.totalorder %s101_s22, 0  ;;  %s104_s23 = sadd.s32 1, %s688_s11 }
  0x10   : > { %s952_s21 = scalar_select %p780_p6, 1, 0 }
  0x11   : > { %s788_s24 = scalar_select %p102_p7, %s688_s11, %s104_s23  }
  0x12   : > { %p114_p8 = scmp.ne.s32.totalorder %s688_s11, %s684_s10  ;;  %p115_p9 = scmp.eq.s32.totalorder %s416_s17, 1 }
  0x13   : > { %p120_p10 = scmp.ne.s32.totalorder %s684_s10, %s680_s9  ;;  %p121_p11 = scmp.eq.s32.totalorder %s417_s18, 1 }
  0x14   : > { %p794_p12 = por %p115_p9, %p114_p8  ;;  %p458_p1 = scmp.lt.s32.totalorder %s708_s16, 2 }
  0x15   : > { %p799_p0 = por %p121_p11, %p120_p10  ;;  %s710_s27 = smov [#allocation2]  }
  0x16   : > { %s953_s25 = scalar_select %p794_p12, 1, 0 }
  0x17   : > { %s954_s26 = scalar_select %p799_p0, 1, 0 }
  0x18   : > { %s155_s28 = sshll.u32 %s710_s27, 4  ;;  %p806_p2 = pnand %p458_p1, %p776_p4  ;;  %s156_s28 = int_to_ptr.vmem [resolvable:$true] %s155_s28 }
  0x19   : > { %s541_s4 = scalar_lea.hbm %s946_s0, 128 }
  0x1a   : > { %p542_p7 = scmp.ne.s32.totalorder %s946_s0, %s541_s4  ;;  %p543_p8 = pneg %p806_p2 }
  0x1b   : > { %p548_p10 = scmp.lt.u32.totalorder %s541_s4, %s541_s4  ;;  %p550_p11 = scmp.lt.u32.totalorder %s541_s4, %s946_s0 }
  0x1c   : > { %p544_p4 = pnand %p543_p8, %p542_p7 }
  0x1d   : > { %p551_p1 = por %p550_p11, %p548_p10 }
  0x1e   : > { %p545_p9 = pneg %p544_p4 }
  0x20   : > { %p552_p13 = pnand %p551_p1, %p545_p9 }
  0x22   : > { %555 = shalt.err (!%p552_p13)
}
  0x23   : > { %s556_s12 = scalar_lea.vmem %s156_s28, 128  ;;  %s563_s17 = scalar_lea.vmem %s156_s28, 256 }
  0x24   : > { %p557_p3 = scmp.ne.s32.totalorder %s156_s28, %s556_s12  ;;  %p564_p12 = scmp.lt.s32.totalorder %s156_s28, %s156_s28 }
  0x25   : > { %p565_p6 = scmp.lt.s32.totalorder %s563_s17, %s556_s12 }
  0x26   : > { %p559_p5 = pnand %p557_p3, %p543_p8 }
  0x27   : > { %p566_p7 = por %p565_p6, %p564_p12 }
  0x28   : > { %p560_p0 = pneg %p559_p5 }
  0x2a   : > { %p567_p4 = pnand %p566_p7, %p560_p0 }
  0x2c   : > { %570 = shalt.err (!%p567_p4)
}
  0x2d   : > { %450 = dma.hbm_to_vmem [thread:$0]  (!%p806_p2), %s946_s0, 128, %s156_s28, [#allocation3]  }
  0x2e   : > { %p956_p13 = scmp.lt.s32.totalorder %s708_s16, 3  ;;  %p957_p9 = scmp.ge.s32.totalorder %s708_s16, 1 }
  0x2f   : > { %s711_s23 = smov [#allocation5]   ;;  %s571_s4 = scalar_lea.hbm %s947_s1, 128 }
  0x30   : > { %p838_p10 = pnand %p957_p9, %p956_p13  ;;  %s176_s27 = sshll.u32 %s711_s23, 4  ;;  %s177_s27 = int_to_ptr.vmem [resolvable:$true] %s176_s27 }
  0x31   : > { %p572_p6 = scmp.ne.s32.totalorder %s947_s1, %s571_s4  ;;  %p578_p3 = scmp.lt.u32.totalorder %s571_s4, %s571_s4 }
  0x32   : > { %s958_s22 = scalar_select %p838_p10, 1, 0 }
  0x33   : > { %p574_p12 = pnand %p572_p6, %p543_p8  ;;  %p580_p5 = scmp.lt.u32.totalorder %s571_s4, %s947_s1 }
  0x35   : > { %p575_p0 = pneg %p574_p12  ;;  %p581_p11 = por %p580_p5, %p578_p3 }
  0x37   : > { %p582_p1 = pnand %p581_p11, %p575_p0 }
  0x39   : > { %585 = shalt.err (!%p582_p1)
}
  0x3a   : > { %s586_s8 = scalar_lea.vmem %s177_s27, 128  ;;  %s593_s12 = scalar_lea.vmem %s177_s27, 256 }
  0x3b   : > { %p587_p7 = scmp.ne.s32.totalorder %s177_s27, %s586_s8  ;;  %p594_p9 = scmp.lt.s32.totalorder %s177_s27, %s177_s27 }
  0x3c   : > { %p595_p10 = scmp.lt.s32.totalorder %s593_s12, %s586_s8 }
  0x3d   : > { %p589_p4 = pnand %p587_p7, %p543_p8 }
  0x3e   : > { %p596_p6 = por %p595_p10, %p594_p9 }
  0x3f   : > { %p590_p13 = pneg %p589_p4 }
  0x41   : > { %p597_p12 = pnand %p596_p6, %p590_p13 }
  0x43   : > { %600 = shalt.err (!%p597_p12)
}
  0x44   : > { %453 = dma.hbm_to_vmem [thread:$0]  (!%p806_p2), %s947_s1, 128, %s177_s27, [#allocation6]  }
  0x45   : > { %p959_p0 = scmp.ne.s32.totalorder %s958_s22, 0 }
  0x46   : > { %s187_s20 = sand.u32 (!%p959_p0), 1, %s696_s13   ;;  %p960_p8 = scmp.ne.s32.totalorder (!%p959_p0), %s952_s21, 0 }
  0x47   : > { %185 = sbr.rel (%p959_p0) target bundleno = 144 (0x90), region = 28  ;;  %s425_s23 = sshll.u32 (!%p959_p0), %s187_s20, 3 }
  0x48   : > { %s188_s30 = scalar_lea.sflag (!%p959_p0), [#allocation3], %s187_s20  ;;  %s191_s3 = scalar_lea.vmem (!%p959_p0), [#allocation2], %s425_s23 }
  0x4e   : > { %666 = dma.done.wait (%p960_p8), %s188_s30, 128  }
  0x4f   : > { %668 = vsyncadd (%p960_p8), %s188_s30, 4294967168  ;;  %s197_s29 = scalar_lea.sflag [#allocation6], %s187_s20  ;;  %s200_s4 = scalar_lea.vmem [#allocation5], %s425_s23 }
  0x50   : > { %670 = dma.done.wait (%p960_p8), %s197_s29, 128  }
  0x51   : > { %672 = vsyncadd (%p960_p8), %s197_s29, 4294967168  ;;  %s428_s22 = sshll.u32 %s700_s14, 3  ;;  %v242_v0 = vlaneseq  ;;  %s223_s27 = sand.u32 1, %s684_s10   ;;  %v251_v7 = vld [vmem:[%s191_s3] sm:$0xff]  ;;  %v253_v8 = vld [vmem:[%s200_s4] sm:$0xff] }
  0x52   : > { %v244_v1 = vstv %s428_s22  ;;  %s427_s5 = sshll.u32 %s223_s27, 5  ;;  %s440_s6 = sshll.u32 %s700_s14, 9 }
  0x53   : > { %v243_v2 = vshrl.u32 %v242_v0, 7  ;;  %v247_v4 = vand.u32 127, %v242_v0  ;;  %s877_s21 = scalar_lea.vmem [#allocation7], %s427_s5  ;;  %s886_s12 = scalar_lea.hbm %s948_s2, %s440_s6 }
  0x54   : > { %s312_s28 = sshll.u32 %s877_s21, 4  ;;  %s894_s17 = scalar_lea.sflag [#allocation4], %s223_s27  ;;  %s888_s28 = int_to_ptr.vmem [resolvable:$true] %s312_s28 }
  0x55   : > { %v245_v3 = vadd.s32 %v244_v1, %v243_v2  ;;  %s601_s14 = scalar_lea.vmem %s888_s28, 512  ;;  %p961_p10 = scmp.ne.s32.totalorder %s953_s25, 0 }
  0x56   : > { %p602_p2 = scmp.ne.s32.totalorder %s888_s28, %s601_s14  ;;  %s712_s18 = smov [#allocation7]  }
  0x57   : > { %v248_v5 = vmul.u32 128, %v245_v3  ;;  %s605_s20 = sshll.u32 %s712_s18, 4  ;;  %s606_s20 = int_to_ptr.vmem [resolvable:$false] %s605_s20 }
  0x58   : > { %p603_p3 = pnand %p602_p2, %p961_p10  ;;  %s607_s23 = scalar_lea.vmem %s606_s20, 1024 }
  0x59   : > { %v249_v6 = vadd.s32 %v248_v5, %v247_v4  ;;  %p608_p11 = scmp.lt.s32.totalorder %s888_s28, %s606_s20  ;;  %p609_p1 = scmp.lt.s32.totalorder %s607_s23, %s601_s14 }
  0x5a   : > { %p604_p5 = pneg %p603_p3 }
  0x5b   : > { %vm250_vm0 = vcmp.lt.s32.totalorder %v249_v6, 512  ;;  %p610_p7 = por %p609_p1, %p608_p11 }
  0x5c   : > { %v252_v9 = vsel %vm250_vm0, %v251_v7, -100.0  ;;  %v254_v10 = vsel %vm250_vm0, %v253_v8, 0.0 }
  0x5d   : > { %v255_v11 = vand.u32 2147483647, %v252_v9  ;;  %432 = vst [vmem:[%s877_s21 + $0x10] sm:$0xff] %v254_v10  ;;  %v265_v18 = vmax.f32 %v252_v9, 0.0  ;;  %v266_v19 = vmul.f32 %v254_v10, %v252_v9  ;;  %vm262_vm1 = vcmp.ge.f32.partialorder %v252_v9, 0.0  ;;  %p611_p4 = pnand %p610_p7, %p604_p5 }
  0x5f   : > { %v256_v12 = vsub.f32 0.0, %v255_v11  ;;  %v267_v25 = vsub.f32 %v265_v18, %v266_v19 }
  0x61   : > { %v257_v13 = vmul.f32 1.442695, %v256_v12 }
  0x63   : > { %535 = vpow2.f32 %v257_v13 }
  0x6d   : > { %v536_v14 = vpop.eup %535 }
  0x6e   : > { %v259_v15 = vadd.f32 1.0, %v536_v14  ;;  %v271_v16 = vmul.f32 -0.5, %v536_v14  ;;  %v274_v20 = vand.u32 2147483647, %v536_v14 }
  0x70   : > { %537 = vrcp.f32 %v259_v15  ;;  %v272_v17 = vadd.f32 1.0, %v271_v16  ;;  %vm275_vm2 = vcmp.lt.f32.partialorder %v274_v20, 0.0004427343 }
  0x71   : > { %539 = vlog2.f32 %v259_v15 }
  0x72   : > { %v273_v22 = vmul.f32 %v536_v14, %v272_v17 }
  0x7a   : > { %v538_v21 = vpop.eup %537 }
  0x7b   : > { %v540_v23 = vpop.eup %539  ;;  %v263_v24 = vmul.f32 %v538_v21, %v536_v14 }
  0x7c   : > { %v270_v26 = vmul.f32 0.6931472, %v540_v23 }
  0x7d   : > { %v264_v27 = vsel %vm262_vm1, %v538_v21, %v263_v24 }
  0x7e   : > { %v279_v28 = vmul.f32 %v264_v27, %v254_v10  ;;  %v276_v29 = vsel %vm275_vm2, %v273_v22, %v270_v26  ;;  %430 = vst [vmem:[%s877_s21 + $0x8] sm:$0xff] %v264_v27 }
  0x7f   : > { %v277_v30 = vadd.f32 %v276_v29, %v267_v25 }
  0x80   : > { %282 = vst [vmem:[%s877_s21] sm:$0xff] %v279_v28 }
  0x81   : > { %434 = vst [vmem:[%s877_s21 + $0x18] sm:$0xff] %v277_v30 }
  0x82   : > { %614 = shalt.err (!%p611_p4)
}
  0x83   : > { %s615_s30 = scalar_lea.hbm %s886_s12, 512  ;;  %s619_s4 = scalar_lea.hbm %s948_s2, 1024 }
  0x84   : > { %p616_p13 = scmp.ne.s32.totalorder %s886_s12, %s615_s30  ;;  %p620_p12 = scmp.lt.u32.totalorder %s886_s12, %s948_s2 }
  0x85   : > { %p621_p0 = scmp.lt.u32.totalorder %s619_s4, %s615_s30  ;;  %p623_p2 = scmp.lt.u32.totalorder %s615_s30, %s886_s12 }
  0x86   : > { %p617_p9 = pnand %p616_p13, %p961_p10 }
  0x87   : > { %p622_p8 = por %p621_p0, %p620_p12 }
  0x88   : > { %p618_p6 = pneg %p617_p9 }
  0x89   : > { %p624_p3 = por %p623_p2, %p622_p8 }
  0x8b   : > { %p625_p5 = pnand %p624_p3, %p618_p6 }
  0x8d   : > { %628 = shalt.err (!%p625_p5)
}
  0x8e   : > { %s713_s5 = smov 128   ;;  %s714_s21 = smov 8  }
  0x8f   : > { %445 = dma.vmem_to_hbm [thread:$0]  (%p961_p10), %s888_s28, 512, %s886_s12, %s894_s17, %s713_s5, %s713_s5, %s714_s21  }
  0x90 PF: > { %s327_s6 = sand.u32 1, %s680_s9   ;;  %p962_p11 = scmp.ne.s32.totalorder %s954_s26, 0 }
  0x91   : > { %p963_p1 = scmp.ge.s32.totalorder %s708_s16, 2  ;;  %s328_s7 = scalar_lea.sflag [#allocation4], %s327_s6 }
  0x93   : > { %p455_p7 = pnand %p963_p1, %p962_p11 }
  0x95   : > { %674 = dma.done.wait (!%p455_p7), %s328_s7, 512  }
  0x96   : > { %676 = vsyncadd (!%p455_p7), %s328_s7, 4294966784  ;;  %s21_s16 = sadd.s32 1, %s708_s16   ;;  %s964_s9 = smov %s684_s10 }
  0x97   : > { %p18_p4 = scmp.ge.s32.totalorder %s21_s16, 4   ;;  %s965_s10 = smov %s688_s11 }
  0x98   : > { %s966_s11 = smov %s788_s24  ;;  %s967_s12 = smov %s696_s13 }
  0x99   : > { %s936_s13 = smov 0   ;;  %s968_s14 = smov %s704_s15 }
  0x9a   : > { %s969_s15 = smov %s971_s19  ;;  %20 = sbr.rel (!%p18_p4) target bundleno = 9 (0x9), region = 93 }
  0xa1   :  { %333 = vsyncpa [#allocation3], 1 }
  0xa2   :  { %335 = vsyncpa [#allocation3 + $0x1], 1 }
  0xa3   :  { %336 = vsyncpa [#allocation6], 1 }
  0xa4   :  { %338 = vsyncpa [#allocation6 + $0x1], 1 }
  0xa5   :  { %339 = vsyncpa [#allocation4], 1 }
  0xa6   :  { %341 = vsyncpa [#allocation4 + $0x1], 1 }

</bundles_post_ra>
